<compile_context>
chip_gen: v7x
topology: tpu7x:2x2x1
jax: 0.10.0
libtpu: 0.0.40
codegen_flags: <defaults>
</compile_context>

<pallas_src>
import jax
import jax.numpy as jnp
import numpy as np
from jax.experimental import pallas as pl
from jax.experimental.pallas import tpu as pltpu


def _make_mse_kernel(inv_total):
    """inv_total is a Python float -> becomes a jaxpr literal (no captured consts)."""

    def kernel(y_ref, e_ref, out_ref, acc_ref):
        i = pl.program_id(0)

        d = e_ref[...] - y_ref[...]          # (row_tile, lanes) f32
        sq = d * d                           # VALU, full vreg

        # Accumulate element-wise partial sums (batched epilogue: no per-tile
        # cross-lane reduce, no per-tile scalar accumulation chain).
        @pl.when(i == 0)
        def _():
            acc_ref[...] = sq

        @pl.when(i != 0)
        def _():
            acc_ref[...] = acc_ref[...] + sq

        # Single reduction + mean scaling on the last grid step.
        @pl.when(i == pl.num_programs(0) - 1)
        def _():
            out_ref[0, 0] = jnp.sum(acc_ref[...]) * inv_total

    return kernel


def _pick_row_tile(rows, lanes):
    """Whole array if it is small; otherwise a multiple-of-8 divisor of `rows` whose
    tile stays <= ~2 MiB per input (lane-dense, generation-portable)."""
    bytes_full = rows * lanes * 4
    if bytes_full <= (2 << 20):
        return rows
    max_rows = max(8, (2 << 20) // (lanes * 4))
    cand = min(rows, (max_rows // 8) * 8)
    while cand >= 8:
        if rows % cand == 0:
            return cand
        cand -= 8
    return rows  # fallback: single block


def mean_squared_error(y_pred, expressions):
    """Pallas TPU equivalent of nn.MSELoss()(expressions, y_pred)."""
    assert y_pred.shape == expressions.shape, "y_pred / expressions shape mismatch"

    shape = expressions.shape
    total = 1
    for s in shape:
        total *= int(s)

    # Flatten to 2D, keeping the last dim on the lane axis.
    if len(shape) >= 2:
        lanes = int(shape[-1])
        rows = total // lanes
    else:
        lanes = total
        rows = 1

    y2 = jnp.reshape(y_pred, (rows, lanes)).astype(jnp.float32)
    e2 = jnp.reshape(expressions, (rows, lanes)).astype(jnp.float32)

    row_tile = _pick_row_tile(rows, lanes)
    grid = (rows // row_tile,)
    inv_total = 1.0 / float(total)

    ssum = pl.pallas_call(
        _make_mse_kernel(inv_total),
        out_shape=jax.ShapeDtypeStruct((1, 1), jnp.float32),
        grid_spec=pltpu.PrefetchScalarGridSpec(
            num_scalar_prefetch=0,
            grid=grid,
            in_specs=[
                pl.BlockSpec((row_tile, lanes), lambda i: (i, 0)),  # y_pred
                pl.BlockSpec((row_tile, lanes), lambda i: (i, 0)),  # expressions
            ],
            out_specs=pl.BlockSpec(
                (1, 1), lambda i: (0, 0),
                memory_space=pltpu.MemorySpace.SMEM,
            ),
            scratch_shapes=[pltpu.VMEM((row_tile, lanes), jnp.float32)],
        ),
        compiler_params=pltpu.CompilerParams(
            dimension_semantics=("arbitrary",),  # reduction axis (accumulator resident)
        ),
    )(y2, e2)

    return ssum[0, 0]


if __name__ == "__main__":
    key = jax.random.PRNGKey(0)
    k1, k2 = jax.random.split(key)

    # Small shapes consistent with the module: (batch, gene-expression features).
    batch, genes = 8, 256
    expressions = jax.random.normal(k1, (batch, genes), dtype=jnp.float32)
    y_pred = expressions + 0.1 * jax.random.normal(k2, (batch, genes), dtype=jnp.float32)

    loss = mean_squared_error(y_pred, expressions)
    loss = jax.block_until_ready(loss)

    ref = jnp.mean((expressions - y_pred) ** 2)
    np.testing.assert_allclose(np.asarray(loss), np.asarray(ref), rtol=1e-5, atol=1e-6)

    print("KERNEL_OK")
</pallas_src>

<mosaic_0001>
module attributes {stable_mosaic.version = 11 : i64} {
  func.func @kernel(%arg0: i32, %arg1: memref<8x256xf32, #tpu.memory_space<vmem>>, %arg2: memref<8x256xf32, #tpu.memory_space<vmem>>, %arg3: memref<1x1xf32, #tpu.memory_space<smem>>, %arg4: memref<8x256xf32, #tpu.memory_space<vmem>>) attributes {dimension_semantics = [#tpu.dimension_semantics<arbitrary>], iteration_bounds = array<i64: 1>, scalar_prefetch = 0 : i64, scratch_operands = 1 : i64, tpu.core_type = #tpu.core_type<tc>, window_params = [{transform_indices = @transform_0, window_bounds = array<i64: 8, 256>}, {transform_indices = @transform_1, window_bounds = array<i64: 8, 256>}, {transform_indices = @transform_2, window_bounds = array<i64: 1, 1>}]} {
    %c0 = arith.constant 0 : index
    %c0_0 = arith.constant 0 : index
    %0 = vector.load %arg2[%c0, %c0_0] : memref<8x256xf32, #tpu.memory_space<vmem>>, vector<8x256xf32>
    %c0_1 = arith.constant 0 : index
    %c0_2 = arith.constant 0 : index
    %1 = vector.load %arg1[%c0_1, %c0_2] : memref<8x256xf32, #tpu.memory_space<vmem>>, vector<8x256xf32>
    %2 = arith.subf %0, %1 : vector<8x256xf32>
    %3 = arith.mulf %2, %2 : vector<8x256xf32>
    %c0_i32 = arith.constant 0 : i32
    %4 = arith.cmpi eq, %arg0, %c0_i32 : i32
    %5 = arith.extui %4 : i1 to i32
    %c0_i32_3 = arith.constant 0 : i32
    %6 = arith.cmpi ne, %5, %c0_i32_3 : i32
    scf.if %6 {
      %c0_8 = arith.constant 0 : index
      %c0_9 = arith.constant 0 : index
      %13 = vector.load %arg4[%c0_8, %c0_9] : memref<8x256xf32, #tpu.memory_space<vmem>>, vector<8x256xf32>
      tpu.vector_store %arg4[%c0_8, %c0_9], %3 {strides = array<i32>} : memref<8x256xf32, #tpu.memory_space<vmem>>, vector<8x256xf32>,
    } else {
    }
    %c0_i32_4 = arith.constant 0 : i32
    %7 = arith.cmpi ne, %arg0, %c0_i32_4 : i32
    %8 = arith.extui %7 : i1 to i32
    %c0_i32_5 = arith.constant 0 : i32
    %9 = arith.cmpi ne, %8, %c0_i32_5 : i32
    scf.if %9 {
      %c0_8 = arith.constant 0 : index
      %c0_9 = arith.constant 0 : index
      %13 = vector.load %arg4[%c0_8, %c0_9] : memref<8x256xf32, #tpu.memory_space<vmem>>, vector<8x256xf32>
      %14 = arith.addf %13, %3 : vector<8x256xf32>
      %c0_10 = arith.constant 0 : index
      %c0_11 = arith.constant 0 : index
      %15 = vector.load %arg4[%c0_10, %c0_11] : memref<8x256xf32, #tpu.memory_space<vmem>>, vector<8x256xf32>
      tpu.vector_store %arg4[%c0_10, %c0_11], %14 {strides = array<i32>} : memref<8x256xf32, #tpu.memory_space<vmem>>, vector<8x256xf32>,
    } else {
    }
    %c0_i32_6 = arith.constant 0 : i32
    %10 = arith.cmpi eq, %arg0, %c0_i32_6 : i32
    %11 = arith.extui %10 : i1 to i32
    %c0_i32_7 = arith.constant 0 : i32
    %12 = arith.cmpi ne, %11, %c0_i32_7 : i32
    scf.if %12 {
      %c0_8 = arith.constant 0 : index
      %c0_9 = arith.constant 0 : index
      %13 = vector.load %arg4[%c0_8, %c0_9] : memref<8x256xf32, #tpu.memory_space<vmem>>, vector<8x256xf32>
      %14 = vector.shape_cast %13 : vector<8x256xf32> to vector<1x8x256xf32>
      %cst = arith.constant dense<0.000000e+00> : vector<1xf32>
      %15 = vector.multi_reduction <add>, %14, %cst [1, 2] : vector<1x8x256xf32> to vector<1xf32>
      %16 = vector.shape_cast %15 : vector<1xf32> to vector<1x1x1xf32>
      %17 = vector.extract %16[0, 0, 0] : f32 from vector<1x1x1xf32>
      %cst_10 = arith.constant 4.8828125E-4 : f32
      %18 = arith.mulf %17, %cst_10 : f32
      %c0_11 = arith.constant 0 : index
      %c0_12 = arith.constant 0 : index
      %19 = memref.load %arg3[%c0_11, %c0_12] : memref<1x1xf32, #tpu.memory_space<smem>>
      memref.store %18, %arg3[%c0_11, %c0_12] : memref<1x1xf32, #tpu.memory_space<smem>>
    } else {
    }
    return
  }
  func.func @transform_0(%arg0: i32) -> (i32, i32) {
    %c0_i32 = arith.constant 0 : i32
    %c0_i32_0 = arith.constant 0 : i32
    return %arg0, %c0_i32 : i32, i32
  }
  func.func @transform_1(%arg0: i32) -> (i32, i32) {
    %c0_i32 = arith.constant 0 : i32
    %c0_i32_0 = arith.constant 0 : i32
    return %arg0, %c0_i32 : i32, i32
  }
  func.func @transform_2(%arg0: i32) -> (i32, i32) {
    %c0_i32 = arith.constant 0 : i32
    %c0_i32_0 = arith.constant 0 : i32
    %c0_i32_1 = arith.constant 0 : i32
    return %c0_i32, %c0_i32_0 : i32, i32
  }
}

</mosaic_0001>

<bundles_post_ra>
// kernel: tpu_custom_call.1
= control target key start
LH: loop header
LB: loop body
LE: loop exit
PB: predicated region body
PF: predicated region fallthrough
CT: control target
= control target key end

     0   :  { %7 = vsyncpa [#allocation4], 0  ;;  %s212_s0 = inlined_call_operand.hbm [shape: f32[8,256], index: 0, kind: input, shape index: {}]   ;;  %s213_s1 = inlined_call_operand.hbm [shape: f32[8,256], index: 1, kind: input, shape index: {}]   ;;  %s214_s2 = inlined_call_operand.hbm [shape: f32[1,1], index: 2, kind: output, shape index: {}]  }
   0x1   :  { %8 = vsyncpa [#allocation7], 0 }
   0x2   :  { %9 = vsyncpa [#allocation5], 0  ;;  %s158_s9 = smov [#allocation3]   ;;  %s159_s11 = smov [#allocation6]  }
   0x3   :  { %s16_s10 = sshll.u32 %s158_s9, 4  ;;  %s26_s12 = sshll.u32 %s159_s11, 4  ;;  %s17_s10 = int_to_ptr.vmem [resolvable:$true] %s16_s10  ;;  %s27_s12 = int_to_ptr.vmem [resolvable:$true] %s26_s12 }
   0x4   :  { %s98_s15 = scalar_lea.hbm %s212_s0, 256 }
   0x5   :  { %p99_p0 = scmp.ne.s32.totalorder %s212_s0, %s98_s15  ;;  %p102_p1 = scmp.lt.u32.totalorder %s98_s15, %s212_s0 }
   0x7   :  { %p104_p2 = pnand %p102_p1, %p99_p0 }
   0x9   :  { %107 = shalt.err (!%p104_p2)
}
   0xa   :  { %s108_s20 = scalar_lea.vmem %s17_s10, 256  ;;  %p113_p4 = scmp.lt.s32.totalorder %s17_s10, %s17_s10 }
   0xb   :  { %p109_p3 = scmp.ne.s32.totalorder %s17_s10, %s108_s20  ;;  %p114_p5 = scmp.lt.s32.totalorder %s108_s20, %s108_s20 }
   0xd   :  { %p115_p6 = por %p114_p5, %p113_p4 }
   0xf   :  { %p116_p7 = pnand %p115_p6, %p109_p3 }
  0x11   :  { %119 = shalt.err (!%p116_p7)
}
  0x12   :  { %19 = dma.hbm_to_vmem [thread:$0]  %s212_s0, 256, %s17_s10, [#allocation4]  }
  0x13   :  { %s120_s25 = scalar_lea.hbm %s213_s1, 256 }
  0x14   :  { %p121_p8 = scmp.ne.s32.totalorder %s213_s1, %s120_s25  ;;  %p124_p9 = scmp.lt.u32.totalorder %s120_s25, %s213_s1 }
  0x16   :  { %p126_p10 = pnand %p124_p9, %p121_p8 }
  0x18   :  { %129 = shalt.err (!%p126_p10)
}
  0x19   :  { %s130_s30 = scalar_lea.vmem %s27_s12, 256  ;;  %p135_p12 = scmp.lt.s32.totalorder %s27_s12, %s27_s12 }
  0x1a   :  { %p131_p11 = scmp.ne.s32.totalorder %s27_s12, %s130_s30  ;;  %p136_p13 = scmp.lt.s32.totalorder %s130_s30, %s130_s30 }
  0x1c   :  { %p137_p0 = por %p136_p13, %p135_p12 }
  0x1e   :  { %p138_p1 = pnand %p137_p0, %p131_p11 }
  0x20   :  { %141 = shalt.err (!%p138_p1)
}
  0x21   :  { %29 = dma.hbm_to_vmem [thread:$0]  %s213_s1, 256, %s27_s12, [#allocation7]  }
  0x22   :  { %152 = dma.done.wait [#allocation4], 256  }
  0x23   :  { %153 = vsyncadd [#allocation4], 4294967040 }
  0x24   :  { %154 = dma.done.wait [#allocation7], 256  }
  0x25   :  { %155 = vsyncadd [#allocation7], 4294967040  ;;  %v36_v0 = vld [vmem:[#allocation6] sm:$0xff]  ;;  %v37_v1 = vld [vmem:[#allocation6 + $0x8] sm:$0xff]  ;;  %s142_s7 = scalar_lea.hbm %s214_s2, 16 }
  0x26   :  { %v38_v2 = vld [vmem:[#allocation3] sm:$0xff]  ;;  %v39_v3 = vld [vmem:[#allocation3 + $0x8] sm:$0xff]  ;;  %p143_p2 = scmp.ne.s32.totalorder %s214_s2, %s142_s7  ;;  %p146_p3 = scmp.lt.u32.totalorder %s142_s7, %s214_s2 }
  0x27   :  { %v40_v4 = vsub.f32 %v36_v0, %v38_v2  ;;  %v41_v5 = vsub.f32 %v37_v1, %v39_v3 }
  0x28   :  { %p148_p4 = pnand %p146_p3, %p143_p2 }
  0x29   :  { %v42_v6 = vmul.f32 %v40_v4, %v40_v4  ;;  %v43_v7 = vmul.f32 %v41_v5, %v41_v5 }
  0x2b   :  { %v65_v8 = vadd.f32 %v43_v7, %v42_v6 }
  0x2d   :  { %66 = vadd.xlane.f32.xlu0 %v65_v8 }
  0xba   :  { %v67_v9 = vpop.xlane.xlu0 %66 }
  0xbb   :  { %v68_v10 = vrot.slane %v67_v9, 4 }
  0xbd   :  { %v69_v11 = vadd.f32 %v68_v10, %v67_v9 }
  0xbf   :  { %v70_v12 = vrot.slane %v69_v11, 2 }
  0xc1   :  { %v71_v13 = vadd.f32 %v70_v12, %v69_v11 }
  0xc3   :  { %v72_v14 = vrot.slane %v71_v13, 1 }
  0xc5   :  { %v73_v15 = vadd.f32 %v72_v14, %v71_v13 }
  0xc7   :  { %93 = vpush %v73_v15 }
  0xf8   :  { %s94_s1 = spop %93 }
  0xf9   :  { %s75_s4 = smul.f32 0.00048828125, %s94_s1 }
  0xfb   :  { %77 = sst [smem:[#allocation8]] %s75_s4 }
  0xfc   :  { %151 = shalt.err (!%p148_p4)
}
  0xfd   :  { %s160_s12 = smov [#allocation8]  }
  0xfe   :  { %85 = dma.smem_to_hbm %s160_s12, 16, %s214_s2, [#allocation5]  }
  0xff   :  { %156 = dma.done.wait [#allocation5], 16  }
 0x100   :  { %157 = vsyncadd [#allocation5], 4294967280 }
 0x101   :  { %89 = sfence }
 0x102   :  { %90 = vsyncpa [#allocation4], 1 }
 0x103   :  { %91 = vsyncpa [#allocation7], 1 }
 0x104   :  { %92 = vsyncpa [#allocation5], 1 }

</bundles_post_ra>
